<compile_context>
chip_gen: v6e
topology: v6e:2x2x1
jax: 0.10.0
libtpu: 0.0.40
codegen_flags: <defaults>
</compile_context>

<pallas_src>
import functools

import jax
import jax.numpy as jnp
import numpy as np
from jax import lax
from jax.experimental import pallas as pl
from jax.experimental.pallas import tpu as pltpu

TEMPERATURE = 0.1
BASE_TEMPERATURE = 0.07

# 32 MiB scoped VMEM is <= physical on every generation (v5e/v6e 128 MiB,
# v7x 64 MiB) and above every default scoped limit we need.
_VMEM_LIMIT_BYTES = 32 * 1024 * 1024
# Residency budget leaves headroom for compiler-internal scratch under the
# 32 MiB limit (the resident keys are still double-buffer-allocated by the
# pipeline machinery even though they are only fetched once).
_RESIDENT_BUDGET_BYTES = 24 * 1024 * 1024


def _round_up(x, m):
    return ((x + m - 1) // m) * m


# ---------------------------------------------------------------------------
# Pass 1: row-wise L2 normalization (f32 math), emitted as bf16 for the MXU.
# ---------------------------------------------------------------------------
def _normalize_kernel(x_ref, o_ref):
    x = x_ref[...].astype(jnp.float32)
    ss = jnp.sum(x * x, axis=1, keepdims=True)
    # x * rsqrt(max(ss, eps^2)) == x / max(||x||, eps)  (matches F.normalize).
    o_ref[...] = (x * lax.rsqrt(jnp.maximum(ss, 1e-24))).astype(o_ref.dtype)


# ---------------------------------------------------------------------------
# Shared per-tile math for pass 2.
# ---------------------------------------------------------------------------
def _tile_stats(sim, lab_k, lab_q, k_off, q_off, *, inv_t, n_valid,
                mask_padded_keys):
    """Per-tile SupCon statistics, reduced over the key axis (axis 0).

    sim: (bk, bq) f32 cosine similarities of L2-normalized features.
    lab_k: (bk, 1) int32 key labels; lab_q: (1, bq) int32 query labels.
    Returns (sum_exp, sum_mask_logits, count), each (1, bq) f32.
    """
    bk, bq = sim.shape
    # logits = sim/T - 1/T.  The constant 1/T is the (self-similarity) row max
    # of L2-normalized features; log_prob is shift-invariant, so this matches
    # the reference's masked row-max subtraction exactly.
    logits = (sim - 1.0) * inv_t
    k_idx = k_off + lax.broadcasted_iota(jnp.int32, (bk, bq), 0)   # global key idx
    q_idx = q_off + lax.broadcasted_iota(jnp.int32, (bk, bq), 1)   # global query idx
    keep = k_idx != q_idx                      # exclude the diagonal
    if mask_padded_keys:                       # trace-time: only when n_pad != n
        keep &= k_idx < n_valid                # exclude zero-padded key rows
    pos = (lab_k == lab_q) & keep              # same-label positives
    # Axis-0 (sublane-direction) reductions: mostly plain vector adds.
    sum_exp = jnp.sum(jnp.where(keep, jnp.exp(logits), 0.0), axis=0, keepdims=True)
    sum_ml = jnp.sum(jnp.where(pos, logits, 0.0), axis=0, keepdims=True)
    cnt = jnp.sum(pos.astype(jnp.float32), axis=0, keepdims=True)
    return sum_exp, sum_ml, cnt


def _finalize(sum_exp, sum_ml, cnt, loss_scale):
    # mean_log_prob_pos = (sum_ml - cnt * log(sum_exp)) / max(cnt, 1)
    denom = jnp.where(cnt < 1e-6, 1.0, cnt)
    return (-loss_scale) * (sum_ml - cnt * jnp.log(sum_exp)) / denom


# ---------------------------------------------------------------------------
# Pass 2a: resident-key kernel (grid over query blocks only).
# ---------------------------------------------------------------------------
def _supcon_resident_kernel(lab_q_ref, lab_k_ref, qt_ref, kf_ref, loss_ref, *,
                            inv_t, loss_scale, n_valid, block_q,
                            mask_padded_keys):
    qi = pl.program_id(0)
    # (n_pad, d) @ (d, block_q) -> (n_pad, block_q): plain MXU matmul, bf16 in,
    # f32 accumulate, no in-kernel operand transposes.
    sim = jnp.dot(kf_ref[...], qt_ref[...], preferred_element_type=jnp.float32)
    sum_exp, sum_ml, cnt = _tile_stats(
        sim, lab_k_ref[...], lab_q_ref[...], 0, qi * block_q,
        inv_t=inv_t, n_valid=n_valid, mask_padded_keys=mask_padded_keys)
    loss_ref[...] = _finalize(sum_exp, sum_ml, cnt, loss_scale)  # lane-dense (1, bq)


# ---------------------------------------------------------------------------
# Pass 2b: streamed-key fallback (flash-style running accumulators).
# ---------------------------------------------------------------------------
def _supcon_streamed_kernel(lab_q_ref, lab_k_ref, qt_ref, kf_ref, loss_ref,
                            acc_exp, acc_ml, acc_cnt, *,
                            inv_t, loss_scale, n_valid, block_q, block_k,
                            mask_padded_keys):
    qi = pl.program_id(0)
    ki = pl.program_id(1)

    @pl.when(ki == 0)
    def _init():
        acc_exp[...] = jnp.zeros_like(acc_exp)
        acc_ml[...] = jnp.zeros_like(acc_ml)
        acc_cnt[...] = jnp.zeros_like(acc_cnt)

    sim = jnp.dot(kf_ref[...], qt_ref[...], preferred_element_type=jnp.float32)
    sum_exp, sum_ml, cnt = _tile_stats(
        sim, lab_k_ref[...], lab_q_ref[...], ki * block_k, qi * block_q,
        inv_t=inv_t, n_valid=n_valid, mask_padded_keys=mask_padded_keys)
    acc_exp[...] += sum_exp
    acc_ml[...] += sum_ml
    acc_cnt[...] += cnt

    @pl.when(ki == pl.num_programs(1) - 1)
    def _done():
        loss_ref[...] = _finalize(acc_exp[...], acc_ml[...], acc_cnt[...],
                                  loss_scale)


# ---------------------------------------------------------------------------
# Configuration / wrapper.
# ---------------------------------------------------------------------------
def _choose_config(n, d):
    """Returns (resident, block_q, block_k, n_pad, d_pad)."""
    d_pad = max(_round_up(d, 128), 128)
    if n <= 256:
        block_q = max(_round_up(n, 128), 128)   # one lane-aligned query block
        n_pad = block_q
    else:
        block_q = 256                            # full-width 256-wide MXU feed
        n_pad = _round_up(n, block_q)            # >= 2 query blocks (v7x megacore)
    # Conservative VMEM estimate for the resident path: double-buffered keys,
    # double-buffered query block, ~5 f32/int (n_pad, block_q) tile temporaries.
    resident_bytes = (2 * n_pad * d_pad * 2
                      + 2 * d_pad * block_q * 2
                      + 5 * n_pad * block_q * 4)
    if resident_bytes <= _RESIDENT_BUDGET_BYTES:
        return True, block_q, n_pad, n_pad, d_pad
    # Streamed fallback for very large N.
    block_q, block_k = 256, 512
    n_pad = _round_up(n, block_k)
    return False, block_q, block_k, n_pad, d_pad


def supcon_loss(features, labels, temperature=TEMPERATURE,
                base_temperature=BASE_TEMPERATURE, force_streamed=False):
    """features: (N, D) float, labels: (N,) int -> scalar float32 SupCon loss."""
    n, d = features.shape
    resident, block_q, block_k, n_pad, d_pad = _choose_config(n, d)
    if force_streamed and resident:
        resident = False
        block_q, block_k = 256, 512
        n_pad = _round_up(n, block_k)

    feat_p = jnp.zeros((n_pad, d_pad), jnp.float32).at[:n, :d].set(
        features.astype(jnp.float32))
    lab = labels.reshape(-1).astype(jnp.int32)
    lab_k = jnp.full((n_pad, 1), -1, jnp.int32).at[:n, 0].set(lab)   # key labels
    lab_q = jnp.full((1, n_pad), -1, jnp.int32).at[0, :n].set(lab)   # query labels

    # ---- Pass 1: L2 normalize -> bf16 -------------------------------------
    nb = min(n_pad, 256)
    norm_feat = pl.pallas_call(
        _normalize_kernel,
        out_shape=jax.ShapeDtypeStruct((n_pad, d_pad), jnp.bfloat16),
        grid=(n_pad // nb,),
        in_specs=[pl.BlockSpec((nb, d_pad), lambda i: (i, 0))],
        out_specs=pl.BlockSpec((nb, d_pad), lambda i: (i, 0)),
        compiler_params=pltpu.CompilerParams(
            dimension_semantics=("parallel",)),
    )(feat_p)
    # One tiny O(N*D) XLA transpose so every pass-2 matmul is a plain
    # (keys @ queries^T) with no transposed operands inside the kernel.
    norm_feat_t = norm_feat.T                     # (d_pad, n_pad) bf16

    inv_t = 1.0 / temperature
    loss_scale = temperature / base_temperature
    mask_padded_keys = (n_pad != n)
    cost = pl.CostEstimate(
        flops=2 * n_pad * n_pad * d_pad,
        transcendentals=n_pad * n_pad,
        bytes_accessed=2 * n_pad * d_pad * 2 + 12 * n_pad)

    # ---- Pass 2: per-query-row SupCon losses -------------------------------
    if resident:
        kernel = functools.partial(
            _supcon_resident_kernel, inv_t=inv_t, loss_scale=loss_scale,
            n_valid=n, block_q=block_q, mask_padded_keys=mask_padded_keys)
        per_row = pl.pallas_call(
            kernel,
            out_shape=jax.ShapeDtypeStruct((1, n_pad), jnp.float32),
            grid=(n_pad // block_q,),
            in_specs=[
                pl.BlockSpec((1, block_q), lambda qi: (0, qi)),       # query labels
                pl.BlockSpec((n_pad, 1), lambda qi: (0, 0)),          # key labels (resident)
                pl.BlockSpec((d_pad, block_q), lambda qi: (0, qi)),   # queries^T (streamed)
                pl.BlockSpec((n_pad, d_pad), lambda qi: (0, 0)),      # keys (VMEM-resident)
            ],
            out_specs=pl.BlockSpec((1, block_q), lambda qi: (0, qi)),  # lane-dense
            compiler_params=pltpu.CompilerParams(
                dimension_semantics=("parallel",),
                vmem_limit_bytes=_VMEM_LIMIT_BYTES),
            cost_estimate=cost,
        )(lab_q, lab_k, norm_feat_t, norm_feat)
    else:
        # NOTE: if DMA turns out exposed here, pipeline_mode=pl.Buffered(3) on
        # the key-feature spec is the next knob (streamed configuration only).
        kernel = functools.partial(
            _supcon_streamed_kernel, inv_t=inv_t, loss_scale=loss_scale,
            n_valid=n, block_q=block_q, block_k=block_k,
            mask_padded_keys=mask_padded_keys)
        per_row = pl.pallas_call(
            kernel,
            out_shape=jax.ShapeDtypeStruct((1, n_pad), jnp.float32),
            grid=(n_pad // block_q, n_pad // block_k),
            in_specs=[
                pl.BlockSpec((1, block_q), lambda qi, ki: (0, qi)),
                pl.BlockSpec((block_k, 1), lambda qi, ki: (ki, 0)),
                pl.BlockSpec((d_pad, block_q), lambda qi, ki: (0, qi)),
                pl.BlockSpec((block_k, d_pad), lambda qi, ki: (ki, 0)),
            ],
            out_specs=pl.BlockSpec((1, block_q), lambda qi, ki: (0, qi)),
            scratch_shapes=[pltpu.VMEM((1, block_q), jnp.float32)] * 3,
            compiler_params=pltpu.CompilerParams(
                dimension_semantics=("parallel", "arbitrary"),
                vmem_limit_bytes=_VMEM_LIMIT_BYTES),
            cost_estimate=cost,
        )(lab_q, lab_k, norm_feat_t, norm_feat)

    # Final mean over the N real rows (tiny O(N) reduction outside Pallas).
    return jnp.sum(per_row[0, :n]) / jnp.float32(n)


# ---------------------------------------------------------------------------
# Pure-JAX f32 reference mirroring the PyTorch module (for validation).
# ---------------------------------------------------------------------------
def supcon_loss_ref(features, labels, temperature=TEMPERATURE,
                    base_temperature=BASE_TEMPERATURE):
    f = features.astype(jnp.float32)
    f = f / jnp.maximum(jnp.linalg.norm(f, axis=1, keepdims=True), 1e-12)
    labels = labels.reshape(-1, 1)
    n = labels.shape[0]
    mask = (labels == labels.T).astype(jnp.float32)
    logits_mask = 1.0 - jnp.eye(n, dtype=jnp.float32)
    mask = mask * logits_mask
    sim = (f @ f.T) / temperature
    logits_max = jnp.max(sim * logits_mask, axis=1, keepdims=True)
    logits = sim - logits_max
    exp_logits = jnp.exp(logits) * logits_mask
    log_prob = logits - jnp.log(jnp.sum(exp_logits, axis=1, keepdims=True))
    cnt = jnp.sum(mask, axis=1)
    cnt = jnp.where(cnt < 1e-6, 1.0, cnt)
    mean_log_prob_pos = jnp.sum(mask * log_prob, axis=1) / cnt
    return jnp.mean(-(temperature / base_temperature) * mean_log_prob_pos)


if __name__ == "__main__":
    key = jax.random.PRNGKey(0)
    k1, k2, k3, k4 = jax.random.split(key, 4)

    # bf16 MXU operands introduce small (~1e-2) deviations on the logits; the
    # tolerances below are loose enough for that while catching structural bugs.
    TOL = dict(rtol=5e-2, atol=5e-2)

    # 1) Tiny batch -> single 128-wide query block, resident-key path.
    N, D = 8, 32
    feats = jax.random.normal(k1, (N, D), dtype=jnp.float32)
    labs = jax.random.randint(k2, (N,), 0, 3, dtype=jnp.int32)
    out = jax.block_until_ready(supcon_loss(feats, labs))
    ref = jax.block_until_ready(supcon_loss_ref(feats, labs))
    np.testing.assert_allclose(np.asarray(out), np.asarray(ref), **TOL)

    # 2) Multi-query-block resident path (2 blocks of 256).
    N2, D2 = 300, 96
    feats2 = jax.random.normal(k3, (N2, D2), dtype=jnp.float32)
    labs2 = jax.random.randint(k4, (N2,), 0, 10, dtype=jnp.int32)
    out2 = jax.block_until_ready(supcon_loss(feats2, labs2))
    ref2 = jax.block_until_ready(supcon_loss_ref(feats2, labs2))
    np.testing.assert_allclose(np.asarray(out2), np.asarray(ref2), **TOL)

    # 3) Streamed-key fallback kernel, forced at a small size for validation.
    out3 = jax.block_until_ready(supcon_loss(feats2, labs2, force_streamed=True))
    np.testing.assert_allclose(np.asarray(out3), np.asarray(ref2), **TOL)

    print("KERNEL_OK")
</pallas_src>

<mosaic_0001>
module attributes {stable_mosaic.version = 11 : i64} {
  func.func @_normalize_kernel(%arg0: i32, %arg1: memref<128x128xf32, #tpu.memory_space<vmem>>, %arg2: memref<128x128xbf16, #tpu.memory_space<vmem>>) attributes {dimension_semantics = [#tpu.dimension_semantics<parallel>], iteration_bounds = array<i64: 1>, scalar_prefetch = 0 : i64, scratch_operands = 0 : i64, tpu.core_type = #tpu.core_type<tc>, window_params = [{transform_indices = @transform_0, window_bounds = array<i64: 128, 128>}, {transform_indices = @transform_1, window_bounds = array<i64: 128, 128>}]} {
    %c0 = arith.constant 0 : index
    %c0_0 = arith.constant 0 : index
    %0 = vector.load %arg1[%c0, %c0_0] : memref<128x128xf32, #tpu.memory_space<vmem>>, vector<128x128xf32>
    %1 = arith.mulf %0, %0 : vector<128x128xf32>
    %cst = arith.constant dense<0.000000e+00> : vector<128xf32>
    %2 = vector.multi_reduction <add>, %1, %cst [1] : vector<128x128xf32> to vector<128xf32>
    %3 = vector.shape_cast %2 : vector<128xf32> to vector<128x1xf32>
    %cst_1 = arith.constant 1.000000e-24 : f32
    %4 = vector.broadcast %cst_1 : f32 to vector<128x1xf32>
    %5 = arith.maximumf %3, %4 : vector<128x1xf32>
    %6 = math.rsqrt %5 : vector<128x1xf32>
    %7 = vector.broadcast %6 : vector<128x1xf32> to vector<128x128xf32>
    %8 = arith.mulf %0, %7 : vector<128x128xf32>
    %9 = arith.truncf %8 : vector<128x128xf32> to vector<128x128xbf16>
    %c0_2 = arith.constant 0 : index
    %c0_3 = arith.constant 0 : index
    %10 = vector.load %arg2[%c0_2, %c0_3] : memref<128x128xbf16, #tpu.memory_space<vmem>>, vector<128x128xbf16>
    tpu.vector_store %arg2[%c0_2, %c0_3], %9 {strides = array<i32>} : memref<128x128xbf16, #tpu.memory_space<vmem>>, vector<128x128xbf16>,
    return
  }
  func.func @transform_0(%arg0: i32) -> (i32, i32) {
    %c0_i32 = arith.constant 0 : i32
    %c0_i32_0 = arith.constant 0 : i32
    return %arg0, %c0_i32 : i32, i32
  }
  func.func @transform_1(%arg0: i32) -> (i32, i32) {
    %c0_i32 = arith.constant 0 : i32
    %c0_i32_0 = arith.constant 0 : i32
    return %arg0, %c0_i32 : i32, i32
  }
}

</mosaic_0001>

<bundles_post_ra>
// kernel: tpu_custom_call.1
= control target key start
LH: loop header
LB: loop body
LE: loop exit
PB: predicated region body
PF: predicated region fallthrough
CT: control target
= control target key end

     0   :  { %6 = vsyncpa [#allocation3], 0  ;;  %s495_s0 = inlined_call_operand.hbm [shape: f32[128,128], index: 0, kind: input, shape index: {}]   ;;  %s496_s1 = inlined_call_operand.hbm [shape: bf16[128,128], index: 1, kind: output, shape index: {}]  }
   0x1   :  { %7 = vsyncpa [#allocation4], 0  ;;  %s393_s6 = smov [#allocation2]  }
   0x2   :  { %s13_s7 = sshll.u32 %s393_s6, 4  ;;  %s14_s7 = int_to_ptr.vmem [resolvable:$true] %s13_s7 }
   0x3   :  { %s357_s8 = scalar_lea.vmem %s14_s7, 2048  ;;  %p362_p1 = scmp.lt.s32.totalorder %s14_s7, %s14_s7 }
   0x4   :  { %p358_p0 = scmp.ne.s32.totalorder %s14_s7, %s357_s8  ;;  %p363_p2 = scmp.lt.s32.totalorder %s357_s8, %s357_s8 }
   0x6   :  { %p364_p3 = por %p363_p2, %p362_p1 }
   0x8   :  { %p365_p4 = pnand %p364_p3, %p358_p0 }
   0xa   :  { %368 = shalt.err (!%p365_p4)
}
   0xb   :  { %s394_s9 = smov 128   ;;  %s395_s10 = smov 8  }
   0xc   :  { %19 = dma.hbm_to_vmem [thread:$0]  %s495_s0, 2048, %s14_s7, [#allocation3], %s394_s9, %s394_s9, %s395_s10  }
   0xd   :  { %389 = dma.done.wait [#allocation3], 2048  }
   0xe   :  { %390 = vsyncadd [#allocation3], 4294965248  ;;  %v412_v0 = vld [vmem:[#allocation2 + $0x10] sm:$0xff]  ;;  %v414_v1 = vld [vmem:[#allocation2] sm:$0xff]  ;;  %s396_s0 = smov [#allocation5]  }
   0xf   :  { %v416_v2 = vld [vmem:[#allocation2 + $0x18] sm:$0xff]  ;;  %v41_v3 = vmul.f32 %v412_v0, %v412_v0  ;;  %v39_v4 = vmul.f32 %v414_v1, %v414_v1  ;;  %v422_v5 = vld [vmem:[#allocation2 + $0x8] sm:$0xff]  ;;  %v430_v9 = vld [vmem:[#allocation2 + $0x20] sm:$0xff]  ;;  %s220_s13 = sshll.u32 %s396_s0, 4  ;;  %s221_s13 = int_to_ptr.vmem [resolvable:$true] %s220_s13 }
  0x10   :  { %v42_v6 = vmul.f32 %v416_v2, %v416_v2  ;;  %v40_v7 = vmul.f32 %v422_v5, %v422_v5  ;;  %v428_v8 = vld [vmem:[#allocation2 + $0x28] sm:$0xff]  ;;  %v43_v11 = vmul.f32 %v430_v9, %v430_v9  ;;  %v436_v12 = vld [vmem:[#allocation2 + $0x38] sm:$0xff]  ;;  %v438_v13 = vld [vmem:[#allocation2 + $0x30] sm:$0xff]  ;;  %s369_s14 = scalar_lea.vmem %s221_s13, 1024  ;;  %p374_p6 = scmp.lt.s32.totalorder %s221_s13, %s221_s13 }
  0x11   :  { %59 = vadd.xlane.f32.xlu1 %v41_v3  ;;  %55 = vadd.xlane.f32.xlu0 %v39_v4  ;;  %v44_v10 = vmul.f32 %v428_v8, %v428_v8  ;;  %v46_v14 = vmul.f32 %v436_v12, %v436_v12  ;;  %v45_v15 = vmul.f32 %v438_v13, %v438_v13  ;;  %v444_v16 = vld [vmem:[#allocation2 + $0x48] sm:$0xff]  ;;  %v446_v17 = vld [vmem:[#allocation2 + $0x40] sm:$0xff]  ;;  %v452_v20 = vld [vmem:[#allocation2 + $0x58] sm:$0xff]  ;;  %p370_p5 = scmp.ne.s32.totalorder %s221_s13, %s369_s14  ;;  %p375_p7 = scmp.lt.s32.totalorder %s369_s14, %s369_s14 }
  0x12   :  { %v48_v18 = vmul.f32 %v444_v16, %v444_v16  ;;  %v47_v19 = vmul.f32 %v446_v17, %v446_v17  ;;  %v454_v21 = vld [vmem:[#allocation2 + $0x50] sm:$0xff]  ;;  %v50_v22 = vmul.f32 %v452_v20, %v452_v20  ;;  %v460_v24 = vld [vmem:[#allocation2 + $0x68] sm:$0xff]  ;;  %v462_v25 = vld [vmem:[#allocation2 + $0x60] sm:$0xff] }
  0x13   :  { %v49_v23 = vmul.f32 %v454_v21, %v454_v21  ;;  %v52_v26 = vmul.f32 %v460_v24, %v460_v24  ;;  %v51_v27 = vmul.f32 %v462_v25, %v462_v25  ;;  %v468_v28 = vld [vmem:[#allocation2 + $0x78] sm:$0xff]  ;;  %v470_v29 = vld [vmem:[#allocation2 + $0x70] sm:$0xff]  ;;  %p376_p8 = por %p375_p7, %p374_p6 }
  0x14   :  { %v54_v30 = vmul.f32 %v468_v28, %v468_v28  ;;  %v53_v31 = vmul.f32 %v470_v29, %v470_v29 }
  0x15   :  { %61 = vadd.xlane.f32.xlu1 %v42_v6  ;;  %57 = vadd.xlane.f32.xlu0 %v40_v7  ;;  %p377_p9 = pnand %p376_p8, %p370_p5 }
  0x19   :  { %65 = vadd.xlane.f32.xlu1 %v44_v10  ;;  %63 = vadd.xlane.f32.xlu0 %v43_v11 }
  0x1d   :  { %69 = vadd.xlane.f32.xlu1 %v46_v14  ;;  %67 = vadd.xlane.f32.xlu0 %v45_v15 }
  0x21   :  { %73 = vadd.xlane.f32.xlu1 %v48_v18  ;;  %71 = vadd.xlane.f32.xlu0 %v47_v19 }
  0x25   :  { %77 = vadd.xlane.f32.xlu1 %v50_v22  ;;  %75 = vadd.xlane.f32.xlu0 %v49_v23 }
  0x29   :  { %81 = vadd.xlane.f32.xlu1 %v52_v26  ;;  %79 = vadd.xlane.f32.xlu0 %v51_v27 }
  0x2d   :  { %85 = vadd.xlane.f32.xlu1 %v54_v30  ;;  %83 = vadd.xlane.f32.xlu0 %v53_v31 }
  0x9a   :  { %v60_v32 = vpop.xlane.xlu1 %59  ;;  %v56_v33 = vpop.xlane.xlu0 %55 }
  0x9b   :  { %v89_v34 = vmax.f32 %v60_v32, 1e-24  ;;  %v87_v35 = vmax.f32 %v56_v33, 1e-24 }
  0x9d   :  { %317 = vrsqrt.f32 %v89_v34 }
  0x9e   :  { %v62_v36 = vpop.xlane.xlu1 %61  ;;  %v58_v37 = vpop.xlane.xlu0 %57  ;;  %319 = vrsqrt.f32 %v87_v35 }
  0x9f   :  { %v90_v38 = vmax.f32 %v62_v36, 1e-24  ;;  %v88_v39 = vmax.f32 %v58_v37, 1e-24 }
  0xa1   :  { %321 = vrsqrt.f32 %v90_v38 }
  0xa2   :  { %323 = vrsqrt.f32 %v88_v39  ;;  %v66_v40 = vpop.xlane.xlu1 %65  ;;  %v64_v41 = vpop.xlane.xlu0 %63 }
  0xa3   :  { %v92_v42 = vmax.f32 %v66_v40, 1e-24  ;;  %v91_v43 = vmax.f32 %v64_v41, 1e-24 }
  0xa5   :  { %325 = vrsqrt.f32 %v92_v42 }
  0xa6   :  { %327 = vrsqrt.f32 %v91_v43  ;;  %v70_v44 = vpop.xlane.xlu1 %69  ;;  %v68_v45 = vpop.xlane.xlu0 %67 }
  0xa7   :  { %v94_v46 = vmax.f32 %v70_v44, 1e-24  ;;  %v93_v47 = vmax.f32 %v68_v45, 1e-24 }
  0xa9   :  { %329 = vrsqrt.f32 %v94_v46 }
  0xaa   :  { %331 = vrsqrt.f32 %v93_v47  ;;  %v74_v48 = vpop.xlane.xlu1 %73  ;;  %v72_v49 = vpop.xlane.xlu0 %71 }
  0xab   :  { %v96_v50 = vmax.f32 %v74_v48, 1e-24  ;;  %v95_v51 = vmax.f32 %v72_v49, 1e-24  ;;  %v318_v52 = vpop.eup %317 }
  0xac   :  { %v320_v53 = vpop.eup %319  ;;  %v121_v58 = vmul.f32 %v318_v52, %v412_v0 }
  0xad   :  { %333 = vrsqrt.f32 %v96_v50  ;;  %v119_v62 = vmul.f32 %v320_v53, %v414_v1 }
  0xae   :  { %v322_v54 = vpop.eup %321  ;;  %335 = vrsqrt.f32 %v95_v51  ;;  %v78_v55 = vpop.xlane.xlu1 %77 }
  0xaf   :  { %v76_v56 = vpop.xlane.xlu0 %75  ;;  %v324_v57 = vpop.eup %323  ;;  %v122_v59 = vmul.f32 %v322_v54, %v416_v2  ;;  %v98_v60 = vmax.f32 %v78_v55, 1e-24 }
  0xb0   :  { %v97_v61 = vmax.f32 %v76_v56, 1e-24  ;;  %v120_v63 = vmul.f32 %v324_v57, %v422_v5 }
  0xb1   :  { %v272_v3 = vpack.c.bf16 %v122_v59, %v121_v58  ;;  %337 = vrsqrt.f32 %v98_v60 }
  0xb2   :  { %v326_v4 = vpop.eup %325  ;;  %v267_v6 = vpack.c.bf16 %v120_v63, %v119_v62  ;;  %339 = vrsqrt.f32 %v97_v61  ;;  %v82_v7 = vpop.xlane.xlu1 %81 }
  0xb3   :  { %v80_v10 = vpop.xlane.xlu0 %79  ;;  %v328_v11 = vpop.eup %327  ;;  %304 = vst [vmem:[#allocation5 + $0x8] sm:$0xff] %v272_v3   ;;  %v124_v14 = vmul.f32 %v326_v4, %v428_v8  ;;  %v100_v0 = vmax.f32 %v82_v7, 1e-24 }
  0xb4   :  { %v99_v15 = vmax.f32 %v80_v10, 1e-24  ;;  %268 = vst [vmem:[#allocation5] sm:$0xff] %v267_v6   ;;  %v123_v2 = vmul.f32 %v328_v11, %v430_v9 }
  0xb5   :  { %341 = vrsqrt.f32 %v100_v0 }
  0xb6   :  { %v330_v1 = vpop.eup %329  ;;  %v277_v18 = vpack.c.bf16 %v124_v14, %v123_v2  ;;  %343 = vrsqrt.f32 %v99_v15  ;;  %v86_v5 = vpop.xlane.xlu1 %85 }
  0xb7   :  { %v84_v19 = vpop.xlane.xlu0 %83  ;;  %v332_v22 = vpop.eup %331  ;;  %v126_v23 = vmul.f32 %v330_v1, %v436_v12  ;;  %v102_v26 = vmax.f32 %v86_v5, 1e-24 }
  0xb8   :  { %v101_v27 = vmax.f32 %v84_v19, 1e-24  ;;  %305 = vst [vmem:[#allocation5 + $0x10] sm:$0xff] %v277_v18   ;;  %v125_v30 = vmul.f32 %v332_v22, %v438_v13 }
  0xb9   :  { %345 = vrsqrt.f32 %v102_v26 }
  0xba   :  { %v334_v8 = vpop.eup %333  ;;  %v282_v31 = vpack.c.bf16 %v126_v23, %v125_v30  ;;  %347 = vrsqrt.f32 %v101_v27 }
  0xbb   :  { %v336_v32 = vpop.eup %335  ;;  %v128_v9 = vmul.f32 %v334_v8, %v444_v16 }
  0xbc   :  { %306 = vst [vmem:[#allocation5 + $0x18] sm:$0xff] %v282_v31   ;;  %v127_v33 = vmul.f32 %v336_v32, %v446_v17 }
  0xbe   :  { %v338_v34 = vpop.eup %337  ;;  %v287_v35 = vpack.c.bf16 %v128_v9, %v127_v33 }
  0xbf   :  { %v340_v36 = vpop.eup %339  ;;  %v130_v12 = vmul.f32 %v338_v34, %v452_v20 }
  0xc0   :  { %307 = vst [vmem:[#allocation5 + $0x20] sm:$0xff] %v287_v35   ;;  %v129_v37 = vmul.f32 %v340_v36, %v454_v21 }
  0xc2   :  { %v342_v38 = vpop.eup %341  ;;  %v292_v13 = vpack.c.bf16 %v130_v12, %v129_v37 }
  0xc3   :  { %v344_v39 = vpop.eup %343  ;;  %v132_v40 = vmul.f32 %v342_v38, %v460_v24 }
  0xc4   :  { %308 = vst [vmem:[#allocation5 + $0x28] sm:$0xff] %v292_v13   ;;  %v131_v41 = vmul.f32 %v344_v39, %v462_v25 }
  0xc6   :  { %v346_v16 = vpop.eup %345  ;;  %v297_v42 = vpack.c.bf16 %v132_v40, %v131_v41 }
  0xc7   :  { %v348_v17 = vpop.eup %347  ;;  %v134_v43 = vmul.f32 %v346_v16, %v468_v28 }
  0xc8   :  { %309 = vst [vmem:[#allocation5 + $0x30] sm:$0xff] %v297_v42   ;;  %v133_v20 = vmul.f32 %v348_v17, %v470_v29 }
  0xca   :  { %v302_v21 = vpack.c.bf16 %v134_v43, %v133_v20 }
  0xcc   :  { %310 = vst [vmem:[#allocation5 + $0x38] sm:$0xff] %v302_v21  }
  0xcd   :  { %380 = shalt.err (!%p377_p9)
}
  0xce   :  { %s397_s15 = smov 64   ;;  %s398_s16 = smov 4  }
  0xcf   :  { %226 = dma.vmem_to_hbm [thread:$0]  %s221_s13, 1024, %s496_s1, [#allocation4], %s397_s15, %s397_s15, %s398_s16  }
  0xd0   :  { %391 = dma.done.wait [#allocation4], 1024  }
  0xd1   :  { %392 = vsyncadd [#allocation4], 4294966272 }
  0xd2   :  { %230 = vsyncpa [#allocation3], 1 }
  0xd3   :  { %231 = vsyncpa [#allocation4], 1 }

</bundles_post_ra>
